<compile_context>
chip_gen: v6e
topology: v6e:2x2x1
jax: 0.10.0
libtpu: 0.0.40
codegen_flags: <defaults>
</compile_context>

<pallas_src>
import functools

import jax
import jax.numpy as jnp
from jax.experimental import pallas as pl
from jax.experimental.pallas import tpu as pltpu


# ----------------------------- fused Pallas kernel ---------------------------

def fused_forward_kernel(x_ref, wc_ref, bc_ref, w1_ref, b1_ref, w2_ref, b2_ref,
                         o_ref, *, bn, pool_taps, n_pool):
    """Whole forward pass for one batch-block, all operands VMEM-resident.

    x_ref  : [1, pool_taps*n_pool*bn, kh*kw*c]  im2col'd input; within the block
             rows are ordered (pool_tap a*3+b, pooled pos pi*2+pj, sample).
    wc_ref : [kh*kw*c, oc]   conv weight, rows in (dh, dw, c) order
    bc_ref : [1, oc]
    w1_ref : [n_pool, oc, hid]  fc1 weight split per pooled position
    b1_ref : [1, hid]
    w2_ref : [hid, out]
    b2_ref : [1, out]
    o_ref  : [1, bn, out]    log-softmax output
    """
    oc = wc_ref.shape[-1]

    # ---- conv2d(s=2, p=1) + bias + ReLU: ONE K=36 MXU matmul --------------
    conv = jnp.dot(x_ref[0], wc_ref[...], preferred_element_type=jnp.float32)
    conv = jnp.maximum(conv + bc_ref[...], 0.0)      # [pool_taps*n_pool*bn, oc]

    # ---- maxpool2d(k=3, s=3): max over the 9 pool taps (leading axis) ------
    # Each tap group is n_pool*bn rows (a whole sublane tile when bn is even),
    # so this is pure vreg-wise VPU maxima, no relayout.
    pooled = jnp.max(conv.reshape(pool_taps, n_pool * bn, oc), axis=0)
    pooled = pooled.reshape(n_pool, bn, oc)           # rows (pooled pos, sample)

    # ---- flatten + fc1 + bias + ReLU: no lane concat -----------------------
    # Accumulate one small matmul per pooled position (weights pre-split in the
    # wrapper to match PyTorch's (c, h, w) flatten order).
    h = jnp.dot(pooled[0], w1_ref[0],
                preferred_element_type=jnp.float32) + b1_ref[...]
    for p in range(1, n_pool):
        h = h + jnp.dot(pooled[p], w1_ref[p],
                        preferred_element_type=jnp.float32)
    h = jnp.maximum(h, 0.0)
    # TODO(synk): nn.Dropout(p=0.5) is identity in eval mode; intentionally a no-op.

    # ---- fc2 + log_softmax(dim=1) ------------------------------------------
    z = jnp.dot(h, w2_ref[...], preferred_element_type=jnp.float32) + b2_ref[...]
    s = z - jnp.max(z, axis=-1, keepdims=True)
    lse = jnp.log(jnp.sum(jnp.exp(s), axis=-1, keepdims=True))
    o_ref[0] = s - lse


# ------------------------------ wrapper ---------------------------------------

@jax.jit
def model_forward(x, params):
    n, c, h, w = x.shape
    conv_w, conv_b = params["conv_w"], params["conv_b"]   # [oc,c,3,3], [oc]
    fc1_w, fc1_b = params["fc1_w"], params["fc1_b"]       # [hid, flat], [hid]
    fc2_w, fc2_b = params["fc2_w"], params["fc2_b"]       # [out, hid], [out]

    oc, _, kh, kw = conv_w.shape
    stride, pad = 2, 1
    oh = (h + 2 * pad - kh) // stride + 1
    ow = (w + 2 * pad - kw) // stride + 1
    pool_k = 3
    poh = (oh - pool_k) // pool_k + 1
    pow_ = (ow - pool_k) // pool_k + 1
    n_pool = poh * pow_
    pool_taps = pool_k * pool_k
    kk = kh * kw
    hid = fc1_w.shape[0]
    out_dim = fc2_w.shape[0]

    # Batch-block size for the grid (v7x second TensorCore + VMEM budget as the
    # batch grows). Even bn keeps the in-kernel pool groups sublane-tile aligned.
    bn = 8 if n % 8 == 0 else n
    gb = n // bn

    # ---------------- wrapper-side layout prep (one small XLA fusion) --------
    # NCHW -> NHWC, zero-pad.
    xp = jnp.pad(jnp.transpose(x, (0, 2, 3, 1)),
                 ((0, 0), (pad, pad), (pad, pad), (0, 0)))        # [n, h+2, w+2, c]
    # im2col of the 9 conv taps, ONLY for the conv outputs the maxpool consumes
    # (poh*pool_k x pow_*pool_k window). Columns ordered (dh, dw, c).
    hp_used, wp_used = poh * pool_k, pow_ * pool_k
    taps = []
    for dh in range(kh):
        for dw in range(kw):
            taps.append(xp[:, dh:dh + stride * hp_used:stride,
                            dw:dw + stride * wp_used:stride, :])  # [n,6,6,c]
    x_pat = jnp.stack(taps, axis=3).reshape(n, hp_used, wp_used, kk * c)
    # Reorder rows to (batch-block, pool_tap a, b, pooled pos pi, pj, sample) so
    # the kernel's maxpool is a leading-axis max and the batch stays on matmul rows.
    x_pat = x_pat.reshape(gb, bn, poh, pool_k, pow_, pool_k, kk * c)
    x_taps = x_pat.transpose(0, 3, 5, 2, 4, 1, 6).reshape(
        gb, pool_taps * n_pool * bn, kk * c)

    # Weight repacks (one-time, wrapper-side):
    wc = jnp.transpose(conv_w, (2, 3, 1, 0)).reshape(kk * c, oc)  # [(dh,dw,c), oc]
    bc = conv_b.reshape(1, oc)
    # fc1: PyTorch flatten order is (c, pi, pj); split into per-pooled-position
    # blocks w1r[p, c, :] so the kernel can accumulate without a lane concat.
    w1r = fc1_w.reshape(hid, oc, n_pool).transpose(2, 1, 0)       # [n_pool, oc, hid]
    b1 = fc1_b.reshape(1, hid)
    w2 = fc2_w.T                                                  # [hid, out]
    b2 = fc2_b.reshape(1, out_dim)

    kern = functools.partial(fused_forward_kernel, bn=bn,
                             pool_taps=pool_taps, n_pool=n_pool)
    m_blk = pool_taps * n_pool * bn
    out = pl.pallas_call(
        kern,
        out_shape=jax.ShapeDtypeStruct((gb, bn, out_dim), jnp.float32),
        grid=(gb,),
        in_specs=[
            pl.BlockSpec((1, m_blk, kk * c), lambda g: (g, 0, 0)),
            pl.BlockSpec((kk * c, oc), lambda g: (0, 0)),
            pl.BlockSpec((1, oc), lambda g: (0, 0)),
            pl.BlockSpec((n_pool, oc, hid), lambda g: (0, 0, 0)),
            pl.BlockSpec((1, hid), lambda g: (0, 0)),
            pl.BlockSpec((hid, out_dim), lambda g: (0, 0)),
            pl.BlockSpec((1, out_dim), lambda g: (0, 0)),
        ],
        out_specs=pl.BlockSpec((1, bn, out_dim), lambda g: (g, 0, 0)),
        compiler_params=pltpu.CompilerParams(
            dimension_semantics=("parallel",)),
    )(x_taps, wc, bc, w1r, b1, w2, b2)
    return out.reshape(n, out_dim)


# Pure-JAX reference (for a correctness check only).
def reference_forward(x, params):
    out = jax.lax.conv_general_dilated(
        x, params["conv_w"], window_strides=(2, 2), padding=((1, 1), (1, 1)),
        dimension_numbers=("NCHW", "OIHW", "NCHW"))
    out = jax.nn.relu(out + params["conv_b"][None, :, None, None])
    out = jax.lax.reduce_window(out, -jnp.inf, jax.lax.max,
                                (1, 1, 3, 3), (1, 1, 3, 3), "VALID")
    out = out.reshape(out.shape[0], -1)
    out = jax.nn.relu(out @ params["fc1_w"].T + params["fc1_b"])
    out = out @ params["fc2_w"].T + params["fc2_b"]
    return jax.nn.log_softmax(out, axis=1)


# ------------------------------ main ------------------------------------------

if __name__ == "__main__":
    key = jax.random.PRNGKey(0)
    kx, k1, k2, k3, k4, k5, k6 = jax.random.split(key, 7)

    N, C, H, W = 2, 4, 16, 16
    OC = 8
    # conv 16x16 /2 -> 8x8 ; maxpool k3 s3 -> 2x2 ; flatten -> 8*2*2 = 32
    FLAT = OC * 2 * 2
    HID = 32
    OUT = 10

    params = {
        "conv_w": jax.random.normal(k1, (OC, C, 3, 3), jnp.float32) * 0.1,
        "conv_b": jax.random.normal(k2, (OC,), jnp.float32) * 0.1,
        "fc1_w": jax.random.normal(k3, (HID, FLAT), jnp.float32) * 0.1,   # [out, in]
        "fc1_b": jax.random.normal(k4, (HID,), jnp.float32) * 0.1,
        "fc2_w": jax.random.normal(k5, (OUT, HID), jnp.float32) * 0.1,    # [out, in]
        "fc2_b": jax.random.normal(k6, (OUT,), jnp.float32) * 0.1,
    }
    x = jax.random.normal(kx, (N, C, H, W), jnp.float32)

    out = jax.block_until_ready(model_forward(x, params))
    assert out.shape == (N, OUT), out.shape
    # log_softmax rows must sum (in prob space) to ~1
    assert jnp.allclose(jnp.sum(jnp.exp(out), axis=1), 1.0, atol=1e-4)
    # match the pure-JAX reference of the PyTorch module
    ref = reference_forward(x, params)
    assert jnp.allclose(out, ref, atol=1e-4, rtol=1e-4), jnp.max(jnp.abs(out - ref))
    print("KERNEL_OK")
</pallas_src>

<mosaic_0001>
module attributes {stable_mosaic.version = 11 : i64} {
  func.func @fused_forward_kernel(%arg0: i32, %arg1: memref<1x72x36xf32, #tpu.memory_space<vmem>>, %arg2: memref<36x8xf32, #tpu.memory_space<vmem>>, %arg3: memref<1x8xf32, #tpu.memory_space<vmem>>, %arg4: memref<4x8x32xf32, #tpu.memory_space<vmem>>, %arg5: memref<1x32xf32, #tpu.memory_space<vmem>>, %arg6: memref<32x10xf32, #tpu.memory_space<vmem>>, %arg7: memref<1x10xf32, #tpu.memory_space<vmem>>, %arg8: memref<1x2x10xf32, #tpu.memory_space<vmem>>) attributes {dimension_semantics = [#tpu.dimension_semantics<parallel>], iteration_bounds = array<i64: 1>, scalar_prefetch = 0 : i64, scratch_operands = 0 : i64, tpu.core_type = #tpu.core_type<tc>, window_params = [{transform_indices = @transform_0, window_bounds = array<i64: 1, 72, 36>}, {pipeline_mode = #tpu.pipeline_mode<synchronous>, transform_indices = @transform_1, window_bounds = array<i64: 36, 8>}, {pipeline_mode = #tpu.pipeline_mode<synchronous>, transform_indices = @transform_2, window_bounds = array<i64: 1, 8>}, {pipeline_mode = #tpu.pipeline_mode<synchronous>, transform_indices = @transform_3, window_bounds = array<i64: 4, 8, 32>}, {pipeline_mode = #tpu.pipeline_mode<synchronous>, transform_indices = @transform_4, window_bounds = array<i64: 1, 32>}, {pipeline_mode = #tpu.pipeline_mode<synchronous>, transform_indices = @transform_5, window_bounds = array<i64: 32, 10>}, {pipeline_mode = #tpu.pipeline_mode<synchronous>, transform_indices = @transform_6, window_bounds = array<i64: 1, 10>}, {transform_indices = @transform_7, window_bounds = array<i64: 1, 2, 10>}]} {
    %c0 = arith.constant 0 : index
    %c0_0 = arith.constant 0 : index
    %c0_1 = arith.constant 0 : index
    %0 = vector.load %arg1[%c0, %c0_0, %c0_1] : memref<1x72x36xf32, #tpu.memory_space<vmem>>, vector<1x72x36xf32>
    %1 = vector.shape_cast %0 : vector<1x72x36xf32> to vector<72x36xf32>
    %c0_2 = arith.constant 0 : index
    %c0_3 = arith.constant 0 : index
    %2 = vector.load %arg2[%c0_2, %c0_3] : memref<36x8xf32, #tpu.memory_space<vmem>>, vector<36x8xf32>
    %cst = arith.constant dense<0.000000e+00> : vector<72x8xf32>
    %3 = tpu.matmul %1, %2, %cst {dimension_numbers = #tpu.dot_dimension_numbers<[1], [0], [0], [1], [0, 0, 1, 1], [], []>} : vector<72x36xf32>, vector<36x8xf32>, vector<72x8xf32> -> vector<72x8xf32>
    %c0_4 = arith.constant 0 : index
    %c0_5 = arith.constant 0 : index
    %4 = vector.load %arg3[%c0_4, %c0_5] : memref<1x8xf32, #tpu.memory_space<vmem>>, vector<1x8xf32>
    %5 = vector.broadcast %4 : vector<1x8xf32> to vector<72x8xf32>
    %6 = arith.addf %3, %5 : vector<72x8xf32>
    %cst_6 = arith.constant 0.000000e+00 : f32
    %7 = vector.broadcast %cst_6 : f32 to vector<72x8xf32>
    %8 = arith.maximumf %6, %7 : vector<72x8xf32>
    %9 = vector.shape_cast %8 : vector<72x8xf32> to vector<9x8x8xf32>
    %cst_7 = arith.constant dense<0xFF800000> : vector<8x8xf32>
    %10 = vector.multi_reduction <maximumf>, %9, %cst_7 [0] : vector<9x8x8xf32> to vector<8x8xf32>
    %11 = vector.shape_cast %10 : vector<8x8xf32> to vector<4x2x8xf32>
    %12 = vector.extract_strided_slice %11 {offsets = [0, 0, 0], sizes = [1, 2, 8], strides = [1, 1, 1]} : vector<4x2x8xf32> to vector<1x2x8xf32>
    %13 = vector.shape_cast %12 : vector<1x2x8xf32> to vector<2x8xf32>
    %c0_8 = arith.constant 0 : index
    %c0_9 = arith.constant 0 : index
    %c0_10 = arith.constant 0 : index
    %14 = vector.load %arg4[%c0_8, %c0_9, %c0_10] : memref<4x8x32xf32, #tpu.memory_space<vmem>>, vector<1x8x32xf32>
    %15 = vector.shape_cast %14 : vector<1x8x32xf32> to vector<8x32xf32>
    %cst_11 = arith.constant dense<0.000000e+00> : vector<2x32xf32>
    %16 = tpu.matmul %13, %15, %cst_11 {dimension_numbers = #tpu.dot_dimension_numbers<[1], [0], [0], [1], [0, 0, 1, 1], [], []>} : vector<2x8xf32>, vector<8x32xf32>, vector<2x32xf32> -> vector<2x32xf32>
    %c0_12 = arith.constant 0 : index
    %c0_13 = arith.constant 0 : index
    %17 = vector.load %arg5[%c0_12, %c0_13] : memref<1x32xf32, #tpu.memory_space<vmem>>, vector<1x32xf32>
    %18 = vector.broadcast %17 : vector<1x32xf32> to vector<2x32xf32>
    %19 = arith.addf %16, %18 : vector<2x32xf32>
    %20 = vector.extract_strided_slice %11 {offsets = [1, 0, 0], sizes = [1, 2, 8], strides = [1, 1, 1]} : vector<4x2x8xf32> to vector<1x2x8xf32>
    %21 = vector.shape_cast %20 : vector<1x2x8xf32> to vector<2x8xf32>
    %c1 = arith.constant 1 : index
    %c0_14 = arith.constant 0 : index
    %c0_15 = arith.constant 0 : index
    %22 = vector.load %arg4[%c1, %c0_14, %c0_15] : memref<4x8x32xf32, #tpu.memory_space<vmem>>, vector<1x8x32xf32>
    %23 = vector.shape_cast %22 : vector<1x8x32xf32> to vector<8x32xf32>
    %cst_16 = arith.constant dense<0.000000e+00> : vector<2x32xf32>
    %24 = tpu.matmul %21, %23, %cst_16 {dimension_numbers = #tpu.dot_dimension_numbers<[1], [0], [0], [1], [0, 0, 1, 1], [], []>} : vector<2x8xf32>, vector<8x32xf32>, vector<2x32xf32> -> vector<2x32xf32>
    %25 = arith.addf %19, %24 : vector<2x32xf32>
    %26 = vector.extract_strided_slice %11 {offsets = [2, 0, 0], sizes = [1, 2, 8], strides = [1, 1, 1]} : vector<4x2x8xf32> to vector<1x2x8xf32>
    %27 = vector.shape_cast %26 : vector<1x2x8xf32> to vector<2x8xf32>
    %c2 = arith.constant 2 : index
    %c0_17 = arith.constant 0 : index
    %c0_18 = arith.constant 0 : index
    %28 = vector.load %arg4[%c2, %c0_17, %c0_18] : memref<4x8x32xf32, #tpu.memory_space<vmem>>, vector<1x8x32xf32>
    %29 = vector.shape_cast %28 : vector<1x8x32xf32> to vector<8x32xf32>
    %cst_19 = arith.constant dense<0.000000e+00> : vector<2x32xf32>
    %30 = tpu.matmul %27, %29, %cst_19 {dimension_numbers = #tpu.dot_dimension_numbers<[1], [0], [0], [1], [0, 0, 1, 1], [], []>} : vector<2x8xf32>, vector<8x32xf32>, vector<2x32xf32> -> vector<2x32xf32>
    %31 = arith.addf %25, %30 : vector<2x32xf32>
    %32 = vector.extract_strided_slice %11 {offsets = [3, 0, 0], sizes = [1, 2, 8], strides = [1, 1, 1]} : vector<4x2x8xf32> to vector<1x2x8xf32>
    %33 = vector.shape_cast %32 : vector<1x2x8xf32> to vector<2x8xf32>
    %c3 = arith.constant 3 : index
    %c0_20 = arith.constant 0 : index
    %c0_21 = arith.constant 0 : index
    %34 = vector.load %arg4[%c3, %c0_20, %c0_21] : memref<4x8x32xf32, #tpu.memory_space<vmem>>, vector<1x8x32xf32>
    %35 = vector.shape_cast %34 : vector<1x8x32xf32> to vector<8x32xf32>
    %cst_22 = arith.constant dense<0.000000e+00> : vector<2x32xf32>
    %36 = tpu.matmul %33, %35, %cst_22 {dimension_numbers = #tpu.dot_dimension_numbers<[1], [0], [0], [1], [0, 0, 1, 1], [], []>} : vector<2x8xf32>, vector<8x32xf32>, vector<2x32xf32> -> vector<2x32xf32>
    %37 = arith.addf %31, %36 : vector<2x32xf32>
    %cst_23 = arith.constant 0.000000e+00 : f32
    %38 = vector.broadcast %cst_23 : f32 to vector<2x32xf32>
    %39 = arith.maximumf %37, %38 : vector<2x32xf32>
    %c0_24 = arith.constant 0 : index
    %c0_25 = arith.constant 0 : index
    %40 = vector.load %arg6[%c0_24, %c0_25] : memref<32x10xf32, #tpu.memory_space<vmem>>, vector<32x10xf32>
    %cst_26 = arith.constant dense<0.000000e+00> : vector<2x10xf32>
    %41 = tpu.matmul %39, %40, %cst_26 {dimension_numbers = #tpu.dot_dimension_numbers<[1], [0], [0], [1], [0, 0, 1, 1], [], []>} : vector<2x32xf32>, vector<32x10xf32>, vector<2x10xf32> -> vector<2x10xf32>
    %c0_27 = arith.constant 0 : index
    %c0_28 = arith.constant 0 : index
    %42 = vector.load %arg7[%c0_27, %c0_28] : memref<1x10xf32, #tpu.memory_space<vmem>>, vector<1x10xf32>
    %43 = vector.broadcast %42 : vector<1x10xf32> to vector<2x10xf32>
    %44 = arith.addf %41, %43 : vector<2x10xf32>
    %cst_29 = arith.constant dense<0xFF800000> : vector<2xf32>
    %45 = vector.multi_reduction <maximumf>, %44, %cst_29 [1] : vector<2x10xf32> to vector<2xf32>
    %46 = vector.shape_cast %45 : vector<2xf32> to vector<2x1xf32>
    %47 = vector.broadcast %46 : vector<2x1xf32> to vector<2x10xf32>
    %48 = arith.subf %44, %47 : vector<2x10xf32>
    %49 = math.exp %48 : vector<2x10xf32>
    %cst_30 = arith.constant dense<0.000000e+00> : vector<2xf32>
    %50 = vector.multi_reduction <add>, %49, %cst_30 [1] : vector<2x10xf32> to vector<2xf32>
    %51 = vector.shape_cast %50 : vector<2xf32> to vector<2x1xf32>
    %52 = math.log %51 : vector<2x1xf32>
    %53 = vector.broadcast %52 : vector<2x1xf32> to vector<2x10xf32>
    %54 = arith.subf %48, %53 : vector<2x10xf32>
    %c0_31 = arith.constant 0 : index
    %c0_32 = arith.constant 0 : index
    %c0_33 = arith.constant 0 : index
    %55 = vector.load %arg8[%c0_31, %c0_32, %c0_33] : memref<1x2x10xf32, #tpu.memory_space<vmem>>, vector<1x2x10xf32>
    %56 = vector.shape_cast %55 : vector<1x2x10xf32> to vector<2x10xf32>
    %57 = vector.shape_cast %54 : vector<2x10xf32> to vector<1x2x10xf32>
    tpu.vector_store %arg8[%c0_31, %c0_32, %c0_33], %57 {strides = array<i32>} : memref<1x2x10xf32, #tpu.memory_space<vmem>>, vector<1x2x10xf32>,
    return
  }
  func.func @transform_0(%arg0: i32) -> (i32, i32, i32) {
    %c0_i32 = arith.constant 0 : i32
    %c0_i32_0 = arith.constant 0 : i32
    %c0_i32_1 = arith.constant 0 : i32
    return %arg0, %c0_i32, %c0_i32_0 : i32, i32, i32
  }
  func.func @transform_1(%arg0: i32) -> (i32, i32) {
    %c0_i32 = arith.constant 0 : i32
    %c0_i32_0 = arith.constant 0 : i32
    %c0_i32_1 = arith.constant 0 : i32
    return %c0_i32, %c0_i32_0 : i32, i32
  }
  func.func @transform_2(%arg0: i32) -> (i32, i32) {
    %c0_i32 = arith.constant 0 : i32
    %c0_i32_0 = arith.constant 0 : i32
    %c0_i32_1 = arith.constant 0 : i32
    return %c0_i32, %c0_i32_0 : i32, i32
  }
  func.func @transform_3(%arg0: i32) -> (i32, i32, i32) {
    %c0_i32 = arith.constant 0 : i32
    %c0_i32_0 = arith.constant 0 : i32
    %c0_i32_1 = arith.constant 0 : i32
    %c0_i32_2 = arith.constant 0 : i32
    return %c0_i32, %c0_i32_0, %c0_i32_1 : i32, i32, i32
  }
  func.func @transform_4(%arg0: i32) -> (i32, i32) {
    %c0_i32 = arith.constant 0 : i32
    %c0_i32_0 = arith.constant 0 : i32
    %c0_i32_1 = arith.constant 0 : i32
    return %c0_i32, %c0_i32_0 : i32, i32
  }
  func.func @transform_5(%arg0: i32) -> (i32, i32) {
    %c0_i32 = arith.constant 0 : i32
    %c0_i32_0 = arith.constant 0 : i32
    %c0_i32_1 = arith.constant 0 : i32
    return %c0_i32, %c0_i32_0 : i32, i32
  }
  func.func @transform_6(%arg0: i32) -> (i32, i32) {
    %c0_i32 = arith.constant 0 : i32
    %c0_i32_0 = arith.constant 0 : i32
    %c0_i32_1 = arith.constant 0 : i32
    return %c0_i32, %c0_i32_0 : i32, i32
  }
  func.func @transform_7(%arg0: i32) -> (i32, i32, i32) {
    %c0_i32 = arith.constant 0 : i32
    %c0_i32_0 = arith.constant 0 : i32
    %c0_i32_1 = arith.constant 0 : i32
    return %arg0, %c0_i32, %c0_i32_0 : i32, i32, i32
  }
}

</mosaic_0001>

<bundles_post_ra>
// kernel: model_forward.1
= control target key start
LH: loop header
LB: loop body
LE: loop exit
PB: predicated region body
PF: predicated region fallthrough
CT: control target
= control target key end

     0   :  { %vm76_vm0 = vcmask 1043456   ;;  %v810_v1 = vmov 0.0   ;;  %vm811_vm1 = vmmov 0   ;;  %s1003_s0 = inlined_call_operand.vmem [shape: f32[1,72,36], index: 0, kind: input, shape index: {}]   ;;  %s1004_s1 = inlined_call_operand.vmem [shape: f32[36,8], index: 1, kind: input, shape index: {}]   ;;  %s1005_s2 = inlined_call_operand.vmem [shape: f32[1,8], index: 2, kind: input, shape index: {}]   ;;  %s1006_s3 = inlined_call_operand.vmem [shape: f32[4,8,32], index: 3, kind: input, shape index: {}]   ;;  %s1007_s4 = inlined_call_operand.vmem [shape: f32[1,32], index: 4, kind: input, shape index: {}]   ;;  %s1008_s5 = inlined_call_operand.vmem [shape: f32[32,10], index: 5, kind: input, shape index: {}]   ;;  %s1009_s6 = inlined_call_operand.vmem [shape: f32[1,10], index: 6, kind: input, shape index: {}]   ;;  %s1010_s7 = inlined_call_operand.hbm [shape: f32[1,2,10], index: 7, kind: output, shape index: {}]  }
   0x1   :  { %v40_v0 = vld [vmem:[%s1004_s1 + $0x20] sm:$0xf]  ;;  %702 = vmatprep.subr.mxu0 %v810_v1  ;;  %v39_v2 = vld [vmem:[%s1004_s1 + $0x18] sm:$0xff]  ;;  %770 = vmatprep.subr.mxu1 %v810_v1  ;;  %v38_v3 = vld [vmem:[%s1004_s1 + $0x10] sm:$0xff] }
   0x2   :  { %703 = vmatpush3.msk.msra.mxu0 %vm76_vm0, %v40_v0  ;;  %712 = vmatprep.mubr.msk.f32.mxu0 %vm811_vm1, %v810_v1  ;;  %v37_v4 = vld [vmem:[%s1004_s1 + $0x8] sm:$0xff] }
   0x3   :  { %704 = vmatprep.subr.mxu0 %v810_v1  ;;  %775 = vmatpush3.msk.msra.mxu1 %vm76_vm0, %v40_v0 }
   0x4   :  { %705 = vmatpush3.msra.mxu0 %v39_v2  ;;  %771 = vmatprep.subr.mxu1 %v810_v1 }
   0x5   :  { %706 = vmatprep.subr.mxu0 %v810_v1  ;;  %776 = vmatpush3.msra.mxu1 %v39_v2 }
   0x6   :  { %12 = vsyncpa [#allocation3], 0  ;;  %707 = vmatpush3.msra.mxu0 %v38_v3  ;;  %772 = vmatprep.subr.mxu1 %v810_v1  ;;  %v36_v5 = vld [vmem:[%s1004_s1] sm:$0xff]  ;;  %vm48_vm2 = vcmask 293888   ;;  %v28_v8 = vld [vmem:[%s1003_s0 + $0x8] sm:$0xff]  ;;  %vm199_vm3 = vcmask 64512   ;;  %v222_v52 = vlaneseq }
   0x7   :  { %708 = vmatprep.subr.mxu0 %v810_v1  ;;  %777 = vmatpush3.msra.mxu1 %v38_v3  ;;  %v27_v6 = vld [vmem:[%s1003_s0] sm:$0xff]  ;;  %v29_v9 = vld [vmem:[%s1003_s0 + $0x10] sm:$0xff]  ;;  %v30_v10 = vld [vmem:[%s1003_s0 + $0x18] sm:$0xff]  ;;  %v812_v50 = vmov 1983009808   ;;  %vm552_vm4 = vcmask 261120  }
   0x8   :  { %709 = vmatpush3.msra.mxu0 %v37_v4  ;;  %773 = vmatprep.subr.mxu1 %v810_v1  ;;  %v35_v7 = vld [vmem:[%s1003_s0 + $0x40] sm:$0xff]  ;;  %v32_v12 = vld [vmem:[%s1003_s0 + $0x28] sm:$0xff]  ;;  %v33_v13 = vld [vmem:[%s1003_s0 + $0x30] sm:$0xff]  ;;  %v220_v51 = vunpack.c.l.s4 %v812_v50  ;;  %v223_v2 = vshrl.u32 %v222_v52, 7  ;;  %vm626_vm5 = vcmask 74752  }
   0x9   :  { %710 = vmatprep.subr.mxu0 %v810_v1  ;;  %778 = vmatpush3.msra.mxu1 %v37_v4  ;;  %v31_v11 = vld [vmem:[%s1003_s0 + $0x20] sm:$0xff]  ;;  %v34_v14 = vld [vmem:[%s1003_s0 + $0x38] sm:$0xff] }
   0xa   :  { %711 = vmatpush3.msra.mxu0 %v36_v5  ;;  %774 = vmatprep.subr.mxu1 %v810_v1  ;;  %v235_v15 = vld [vmem:[%s1006_s3] sm:$0xff]  ;;  %v221_v0 = vunpack.c.0.s8 %v220_v51 }
   0xb   :  { %713 = vmatmul.mubr.msk.f32.vlgmr.msra.gmra.mxu0 %vm48_vm2, %v27_v6  ;;  %779 = vmatpush3.msra.mxu1 %v36_v5  ;;  %v654_v27 = vld [vmem:[%s1005_s2] ss:$0 sm:$0xff] }
   0xc   :  { %715 = vmatprep.mubr.msk.f32.mxu0 %vm811_vm1, %v810_v1  ;;  %736 = vmatprep.mubr.msk.f32.mxu1 %vm811_vm1, %v810_v1 }
   0xd   :  { %737 = vmatmul.mubr.msk.f32.vlgmr.msra.gmra.mxu1 %vm48_vm2, %v35_v7  ;;  %739 = vmatprep.subr.mxu1 %v810_v1 }
   0xe   :  { %741 = vmatprep.mubr.msk.f32.mxu1 %vm811_vm1, %v810_v1  ;;  %740 = vmatpush3.msra.mxu1 %v235_v15 }
   0xf   :  { %716 = vmatmul.mubr.msk.f32.gmra.mxu0 %vm48_vm2, %v28_v8  ;;  %744 = vmatprep.subr.mxu1 %v810_v1 }
  0x10   :  { %718 = vmatprep.mubr.msk.f32.mxu0 %vm811_vm1, %v810_v1 }
  0x13   :  { %719 = vmatmul.mubr.msk.f32.gmra.mxu0 %vm48_vm2, %v29_v9 }
  0x14   :  { %721 = vmatprep.mubr.msk.f32.mxu0 %vm811_vm1, %v810_v1 }
  0x17   :  { %722 = vmatmul.mubr.msk.f32.gmra.mxu0 %vm48_vm2, %v30_v10 }
  0x18   :  { %724 = vmatprep.mubr.msk.f32.mxu0 %vm811_vm1, %v810_v1 }
  0x1b   :  { %725 = vmatmul.mubr.msk.f32.gmra.mxu0 %vm48_vm2, %v31_v11  ;;  %v224_v11 = vsub.s32 %v221_v0, %v223_v2 }
  0x1c   :  { %727 = vmatprep.mubr.msk.f32.mxu0 %vm811_vm1, %v810_v1 }
  0x1f   :  { %728 = vmatmul.mubr.msk.f32.gmra.mxu0 %vm48_vm2, %v32_v12 }
  0x20   :  { %730 = vmatprep.mubr.msk.f32.mxu0 %vm811_vm1, %v810_v1 }
  0x23   :  { %731 = vmatmul.mubr.msk.f32.gmra.mxu0 %vm48_vm2, %v33_v13 }
  0x24   :  { %733 = vmatprep.mubr.msk.f32.mxu0 %vm811_vm1, %v810_v1 }
  0x27   :  { %734 = vmatmul.mubr.msk.f32.gmra.mxu0 %vm48_vm2, %v34_v14  ;;  %v667_v14 = vld [vmem:[%s1006_s3 + $0x8] sm:$0xff] }
  0xcb   :  { %v146_v16 = vpop.f32.mrf.mxu0 }
  0xcc   :  { %v147_v30 = vadd.f32 %v654_v27, %v146_v16 }
  0xcd   :  { %v714_v17 = vpop.f32.mrf.mxu0  ;;  %v186_v18 = vpop.f32.mrf.mxu1 }
  0xce   :  { %v187_v36 = vadd.f32 %v654_v27, %v186_v18  ;;  %v190_v37 = vmax.f32 %v147_v30, 0.0  ;;  %v669_v17 = vld [vmem:[%s1006_s3 + $0x10] sm:$0xff] }
  0xcf   :  { %v151_v19 = vpop.f32.mrf.mxu0  ;;  %v738_v20 = vpop.f32.mrf.mxu1 }
  0xd0   :  { %v152_v34 = vadd.f32 %v654_v27, %v151_v19  ;;  %v198_v46 = vmax.f32 %v187_v36, 0.0  ;;  %v200_v48 = vsel %vm199_vm3, %v190_v37, -inf  ;;  %v671_v19 = vld [vmem:[%s1006_s3 + $0x18] sm:$0xff] }
  0xd1   :  { %v717_v21 = vpop.f32.mrf.mxu0 }
  0xd2   :  { %v191_v44 = vmax.f32 %v152_v34, 0.0  ;;  %v212_v60 = vsel %vm199_vm3, %v198_v46, -inf  ;;  %v544_v21 = vld [vmem:[%s1008_s5 + $0x18] sm:$0xff] }
  0xd3   :  { %v156_v22 = vpop.f32.mrf.mxu0 }
  0xd4   :  { %v157_v39 = vadd.f32 %v654_v27, %v156_v22  ;;  %v201_v59 = vsel %vm199_vm3, %v191_v44, -inf  ;;  %v543_v22 = vld [vmem:[%s1008_s5 + $0x10] sm:$0xff] }
  0xd5   :  { %v720_v23 = vpop.f32.mrf.mxu0 }
  0xd6   :  { %v192_v53 = vmax.f32 %v157_v39, 0.0  ;;  %v542_v23 = vld [vmem:[%s1008_s5 + $0x8] sm:$0xff] }
  0xd7   :  { %v161_v24 = vpop.f32.mrf.mxu0 }
  0xd8   :  { %v162_v40 = vadd.f32 %v654_v27, %v161_v24  ;;  %v202_v3 = vsel %vm199_vm3, %v192_v53, -inf  ;;  %v541_v24 = vld [vmem:[%s1008_s5] sm:$0xff] }
  0xd9   :  { %v723_v25 = vpop.f32.mrf.mxu0 }
  0xda   :  { %v193_v54 = vmax.f32 %v162_v40, 0.0 }
  0xdb   :  { %v166_v26 = vpop.f32.mrf.mxu0 }
  0xdc   :  { %v167_v29 = vadd.f32 %v654_v27, %v166_v26  ;;  %v203_v4 = vsel %vm199_vm3, %v193_v54, -inf }
  0xdd   :  { %v726_v28 = vpop.f32.mrf.mxu0 }
  0xde   :  { %v194_v35 = vmax.f32 %v167_v29, 0.0 }
  0xdf   :  { %v171_v31 = vpop.f32.mrf.mxu0 }
  0xe0   :  { %v172_v32 = vadd.f32 %v654_v27, %v171_v31  ;;  %v204_v45 = vsel %vm199_vm3, %v194_v35, -inf }
  0xe1   :  { %v729_v33 = vpop.f32.mrf.mxu0  ;;  %v205_v57 = vmax.f32 %v200_v48, %v204_v45 }
  0xe2   :  { %v195_v41 = vmax.f32 %v172_v32, 0.0 }
  0xe3   :  { %v176_v38 = vpop.f32.mrf.mxu0  ;;  %v213_v6 = vmax.f32 %v205_v57, %v212_v60 }
  0xe4   :  { %v177_v42 = vadd.f32 %v654_v27, %v176_v38  ;;  %v206_v55 = vsel %vm199_vm3, %v195_v41, -inf  ;;  %v673_v38 = vld [vmem:[%s1009_s6] ss:$0 sm:$0xff] }
  0xe5   :  { %v732_v43 = vpop.f32.mrf.mxu0  ;;  %v207_v63 = vmax.f32 %v201_v59, %v206_v55 }
  0xe6   :  { %v196_v47 = vmax.f32 %v177_v42, 0.0 }
  0xe7   :  { %v181_v49 = vpop.f32.mrf.mxu0  ;;  %v214_v9 = vmax.f32 %v213_v6, %v207_v63 }
  0xe8   :  { %v182_v56 = vadd.f32 %v654_v27, %v181_v49  ;;  %v208_v61 = vsel %vm199_vm3, %v196_v47, -inf  ;;  %v665_v27 = vld [vmem:[%s1007_s4] ss:$0 sm:$0xff]  ;;  %s813_s4 = smov [#allocation2]  }
  0xe9   :  { %v735_v58 = vpop.f32.mrf.mxu0  ;;  %v209_v7 = vmax.f32 %v202_v3, %v208_v61  ;;  %s646_s6 = sshll.u32 %s813_s4, 4  ;;  %s647_s6 = int_to_ptr.vmem [resolvable:$true] %s646_s6 }
  0xea   :  { %v197_v62 = vmax.f32 %v182_v56, 0.0  ;;  %s788_s22 = scalar_lea.vmem %s647_s6, 32  ;;  %p793_p1 = scmp.lt.s32.totalorder %s647_s6, %s647_s6 }
  0xeb   :  { %p789_p0 = scmp.ne.s32.totalorder %s647_s6, %s788_s22  ;;  %p794_p2 = scmp.lt.s32.totalorder %s788_s22, %s788_s22 }
  0xec   :  { %v210_v5 = vsel %vm199_vm3, %v197_v62, -inf }
  0xed   :  { %v211_v8 = vmax.f32 %v203_v4, %v210_v5  ;;  %p795_p3 = por %p794_p2, %p793_p1 }
  0xef   :  { %v215_v10 = vmax.f32 %v209_v7, %v211_v8  ;;  %p796_p4 = pnand %p795_p3, %p789_p0 }
  0xf1   :  { %v216_v12 = vmax.f32 %v214_v9, %v215_v10 }
  0xf3   :  { %v225_v13 = vrot.slane %v216_v12, %v224_v11  ;;  %v218_v15 = vcombine.high %v216_v12, %v216_v12 }
  0xf5   :  { %742 = vmatmul.mubr.msk.f32.vlgmr.msra.gmra.mxu1 %vm199_vm3, %v225_v13  ;;  %v233_v16 = vcombine.high %v225_v13, %v225_v13  ;;  %v232_v18 = vrot.slane %v218_v15, %v224_v11 }
  0xf6   :  { %745 = vmatpush3.msra.mxu1 %v667_v14  ;;  %746 = vmatprep.mubr.msk.f32.mxu1 %vm811_vm1, %v810_v1 }
  0xf7   :  { %749 = vmatprep.subr.mxu1 %v810_v1  ;;  %v234_v20 = vcombine.high %v232_v18, %v232_v18 }
  0xf9   :  { %747 = vmatmul.mubr.msk.f32.vlgmr.msra.gmra.mxu1 %vm199_vm3, %v233_v16 }
  0xfa   :  { %750 = vmatpush3.msra.mxu1 %v669_v17  ;;  %751 = vmatprep.mubr.msk.f32.mxu1 %vm811_vm1, %v810_v1 }
  0xfb   :  { %754 = vmatprep.subr.mxu1 %v810_v1 }
  0xfd   :  { %752 = vmatmul.mubr.msk.f32.vlgmr.msra.gmra.mxu1 %vm199_vm3, %v232_v18 }
  0xfe   :  { %755 = vmatpush3.msra.mxu1 %v671_v19  ;;  %756 = vmatprep.mubr.msk.f32.mxu1 %vm811_vm1, %v810_v1 }
  0xff   :  { %759 = vmatprep.subr.mxu1 %v810_v1 }
 0x101   :  { %757 = vmatmul.mubr.msk.f32.vlgmr.msra.gmra.mxu1 %vm199_vm3, %v234_v20 }
 0x102   :  { %767 = vmatprep.mubr.msk.f32.mxu1 %vm811_vm1, %v810_v1  ;;  %760 = vmatpush3.msra.mxu1 %v544_v21 }
 0x103   :  { %761 = vmatprep.subr.mxu1 %v810_v1 }
 0x104   :  { %762 = vmatpush3.msra.mxu1 %v543_v22 }
 0x105   :  { %763 = vmatprep.subr.mxu1 %v810_v1 }
 0x106   :  { %764 = vmatpush3.msra.mxu1 %v542_v23 }
 0x107   :  { %765 = vmatprep.subr.mxu1 %v810_v1 }
 0x108   :  { %766 = vmatpush3.msra.mxu1 %v541_v24 }
 0x1b5   :  { %v311_v25 = vpop.f32.mrf.mxu1 }
 0x1b6   :  { %v312_v30 = vadd.f32 %v665_v27, %v311_v25 }
 0x1b7   :  { %v743_v26 = vpop.f32.mrf.mxu1 }
 0x1b9   :  { %v385_v28 = vpop.f32.mrf.mxu1 }
 0x1ba   :  { %v389_v32 = vadd.f32 %v385_v28, %v312_v30 }
 0x1bb   :  { %v748_v29 = vpop.f32.mrf.mxu1 }
 0x1bd   :  { %v460_v31 = vpop.f32.mrf.mxu1 }
 0x1be   :  { %v464_v34 = vadd.f32 %v460_v31, %v389_v32 }
 0x1bf   :  { %v753_v33 = vpop.f32.mrf.mxu1 }
 0x1c1   :  { %v535_v35 = vpop.f32.mrf.mxu1 }
 0x1c2   :  { %v539_v1 = vadd.f32 %v535_v35, %v464_v34 }
 0x1c3   :  { %v758_v36 = vpop.f32.mrf.mxu1 }
 0x1c4   :  { %v540_v37 = vmax.f32 %v539_v1, 0.0 }
 0x1c6   :  { %768 = vmatmul.mubr.msk.f32.vlgmr.msra.gmra.mxu1 %vm552_vm4, %v540_v37 }
 0x286   :  { %v622_v39 = vpop.f32.mrf.mxu1 }
 0x287   :  { %v623_v40 = vadd.f32 %v673_v38, %v622_v39 }
 0x288   :  { %v769_v41 = vpop.f32.mrf.mxu1 }
 0x289   :  { %v627_v42 = vsel %vm626_vm5, %v623_v40, -inf }
 0x28a   :  { %628 = vmax.xlane.f32.xlu0 %v627_v42 }
 0x313   :  { %v629_v43 = vpop.xlane.xlu0 %628 }
 0x314   :  { %v630_v44 = vsub.f32 %v623_v40, %v629_v43 }
 0x316   :  { %v631_v45 = vmul.f32 1.442695, %v630_v44 }
 0x318   :  { %784 = vpow2.f32 %v631_v45 }
 0x325   :  { %v785_v46 = vpop.eup %784 }
 0x326   :  { %v633_v47 = vsel %vm626_vm5, %v785_v46, 0.0 }
 0x327   :  { %634 = vadd.xlane.f32.xlu0 %v633_v47 }
 0x3b0   :  { %v635_v48 = vpop.xlane.xlu0 %634 }
 0x3b1   :  { %786 = vlog2.f32 %v635_v48 }
 0x3be   :  { %v787_v49 = vpop.eup %786 }
 0x3bf   :  { %v637_v50 = vmul.f32 0.6931472, %v787_v49 }
 0x3c1   :  { %v638_v51 = vsub.f32 %v630_v44, %v637_v50 }
 0x3c3   :  { %639 = vst.msk [vmem:[#allocation2] sm:$0x3] %vm626_vm5, %v638_v51 }
 0x3c4   :  { %799 = shalt.err (!%p796_p4)
}
 0x3c5   :  { %649 = dma.vmem_to_hbm [thread:$0]  %s647_s6, 32, %s1010_s7, [#allocation3]  }
 0x3c6   :  { %808 = dma.done.wait [#allocation3], 32  }
 0x3c7   :  { %809 = vsyncadd [#allocation3], 4294967264 }
 0x3c8   :  { %653 = vsyncpa [#allocation3], 1 }

</bundles_post_ra>
